<compile_context>
chip_gen: v7x
topology: tpu7x:2x2x1
jax: 0.10.0
libtpu: 0.0.40
codegen_flags: <defaults>
</compile_context>

<pallas_src>
import functools

import jax
import jax.numpy as jnp
from jax.experimental import pallas as pl
from jax.experimental.pallas import tpu as pltpu

EXPANSION = 4
BN_EPS = 1e-5
# 48 MiB: fits v7x's 64 MiB-per-TensorCore with headroom; v5e/v6e (128 MiB) could
# go higher, but every tile plan below stays well under this budget anyway.
VMEM_LIMIT = 48 * 1024 * 1024


def _round_up(x, m):
    return (x + m - 1) // m * m


def _row_tile(m, cap):
    """Row tile (multiple of 8; >=2 tiles when possible for v7x megacore) + padded rows."""
    mp8 = _round_up(m, 8)
    if mp8 <= 16:
        return mp8, mp8
    if mp8 <= 2 * cap:
        tm = _round_up(-(-mp8 // 2), 8)
        return tm, 2 * tm
    return cap, _round_up(m, cap)


# ---------------------------------------------------------------------------
# Plain matmul + bias (MXU, bf16 operands, f32 accumulation) with fused BN
# partial statistics in the epilogue.
# ---------------------------------------------------------------------------
def _matmul_kernel(a_ref, b_ref, bias_ref, o_ref, psum_ref, psq_ref, acc_ref):
    @pl.when(pl.program_id(2) == 0)
    def _():
        acc_ref[...] = jnp.zeros_like(acc_ref)

    acc_ref[...] += jnp.dot(a_ref[...], b_ref[...],
                            preferred_element_type=jnp.float32)

    @pl.when(pl.program_id(2) == pl.num_programs(2) - 1)
    def _():
        y = acc_ref[...] + bias_ref[...]
        o_ref[...] = y.astype(o_ref.dtype)
        s = jnp.sum(y, axis=0, keepdims=True)
        q = jnp.sum(y * y, axis=0, keepdims=True)
        psum_ref[...] = jnp.broadcast_to(s[:, None, :], psum_ref.shape)
        psq_ref[...] = jnp.broadcast_to(q[:, None, :], psq_ref.shape)


def matmul_bias(a, b, bias, *, out_dtype=jnp.bfloat16):
    """(M,K) @ (K,N) + bias[N]; also returns per-channel sum / sumsq (f32)."""
    m, k = a.shape
    k2, n = b.shape
    assert k == k2

    tm, mp = _row_tile(m, 512)           # 512-row cap per perf review
    np_ = max(128, _round_up(n, 128))
    tn = 512 if np_ % 512 == 0 else (256 if np_ % 256 == 0 else 128)
    kp = _round_up(k, 128)
    if kp <= 512:
        tk = kp
    elif kp % 512 == 0:
        tk = 512
    elif kp % 256 == 0:
        tk = 256
    else:
        kp = _round_up(k, 256)
        tk = 256

    a = a.astype(jnp.bfloat16)
    b = b.astype(jnp.bfloat16)
    if (mp, kp) != (m, k):
        a = jnp.pad(a, ((0, mp - m), (0, kp - k)))
    if (kp, np_) != (k, n):
        b = jnp.pad(b, ((0, kp - k), (0, np_ - n)))
    bias2 = jnp.pad(bias.astype(jnp.float32), (0, np_ - n)).reshape(1, np_)

    grid = (mp // tm, np_ // tn, kp // tk)
    cost = pl.CostEstimate(flops=2 * mp * kp * np_, transcendentals=0,
                           bytes_accessed=(a.size + b.size) * 2
                           + mp * np_ * jnp.dtype(out_dtype).itemsize)

    # TODO(synk): pl.Buffered(3) on the A spec could hide DMA jitter for
    # A-bandwidth-bound (small-N) shapes; left at the default double-buffering.
    out, psum, psq = pl.pallas_call(
        _matmul_kernel,
        out_shape=(jax.ShapeDtypeStruct((mp, np_), out_dtype),
                   jax.ShapeDtypeStruct((grid[0], 8, np_), jnp.float32),
                   jax.ShapeDtypeStruct((grid[0], 8, np_), jnp.float32)),
        grid_spec=pltpu.PrefetchScalarGridSpec(
            num_scalar_prefetch=0,
            grid=grid,
            in_specs=[
                pl.BlockSpec((tm, tk), lambda i, j, kk: (i, kk)),
                pl.BlockSpec((tk, tn), lambda i, j, kk: (kk, j)),
                pl.BlockSpec((1, tn), lambda i, j, kk: (0, j)),
            ],
            out_specs=[
                pl.BlockSpec((tm, tn), lambda i, j, kk: (i, j)),
                pl.BlockSpec((1, 8, tn), lambda i, j, kk: (i, 0, j)),
                pl.BlockSpec((1, 8, tn), lambda i, j, kk: (i, 0, j)),
            ],
            scratch_shapes=[pltpu.VMEM((tm, tn), jnp.float32)]),
        compiler_params=pltpu.CompilerParams(
            dimension_semantics=("parallel", "parallel", "arbitrary"),
            vmem_limit_bytes=VMEM_LIMIT),
        cost_estimate=cost,
    )(a, b, bias2)
    return out[:m, :n], psum[:, 0, :n].sum(axis=0), psq[:, 0, :n].sum(axis=0)


# ---------------------------------------------------------------------------
# Tap conv: sum of stride-1 "same" dilated KxK convs, no HBM im2col.
# Each filter tap is a shifted window of the zero-padded flattened NHWC slab;
# the shift is a constant flat-row offset, so the kernel DMAs (tm, Cin) tiles
# straight from HBM per tap (double-buffered) and accumulates on the MXU.
# BN partial statistics come out of the same epilogue (garbage rows masked).
# ---------------------------------------------------------------------------
def _tapconv_kernel(offs_ref, a_hbm, w_ref, bias_ref, mask_ref,
                    o_ref, psum_ref, psq_ref, a_buf, sem, acc_ref,
                    *, n_taps, tm):
    i = pl.program_id(0)

    def start(t, slot):
        row = i * tm + offs_ref[t]
        cp = pltpu.make_async_copy(a_hbm.at[pl.ds(row, tm), :],
                                   a_buf.at[slot], sem.at[slot])
        cp.start()
        return cp

    pending = [None, None]
    pending[0] = start(0, 0)
    acc_ref[...] = jnp.zeros_like(acc_ref)
    for t in range(n_taps):
        slot = t % 2
        pending[slot].wait()
        if t + 1 < n_taps:
            pending[1 - slot] = start(t + 1, 1 - slot)
        acc_ref[...] += jnp.dot(a_buf[slot], w_ref[t],
                                preferred_element_type=jnp.float32)

    y = (acc_ref[...] + bias_ref[...]) * mask_ref[...]
    o_ref[...] = y.astype(o_ref.dtype)
    s = jnp.sum(y, axis=0, keepdims=True)
    q = jnp.sum(y * y, axis=0, keepdims=True)
    psum_ref[...] = jnp.broadcast_to(s[:, None, :], psum_ref.shape)
    psq_ref[...] = jnp.broadcast_to(q[:, None, :], psq_ref.shape)


def conv_taps(x, weights, biases, dilations, *, out_dtype=jnp.bfloat16):
    n, h, w_sp, c = x.shape
    kh, kw, _, cout = weights[0].shape
    pmax = max(dilations) * (kh // 2)
    hp, wp = h + 2 * pmax, w_sp + 2 * pmax
    kc = max(128, _round_up(c, 128))
    ncp = max(128, _round_up(cout, 128))

    xp = jnp.pad(x.astype(jnp.bfloat16),
                 ((0, 0), (pmax, pmax), (pmax, pmax), (0, kc - c)))
    m_grid = n * hp * wp
    tm, mrows = _row_tile(m_grid, 512)
    guard = (wp + 1) * pmax               # covers the largest |flat-row shift|
    a_flat = jnp.pad(xp.reshape(m_grid, kc),
                     ((guard, guard + mrows - m_grid), (0, 0)))

    w_list, off_list = [], []
    for wk, d in zip(weights, dilations):
        for ky in range(kh):
            for kx in range(kw):
                w_list.append(jnp.pad(wk[ky, kx].astype(jnp.bfloat16),
                                      ((0, kc - c), (0, ncp - cout))))
                off_list.append(guard + ((ky - kh // 2) * wp + (kx - kw // 2)) * d)
    w_taps = jnp.stack(w_list, axis=0)
    offs = jnp.asarray(off_list, dtype=jnp.int32)
    n_taps = len(off_list)

    if biases is None:
        bias = jnp.zeros((cout,), jnp.float32)
    else:
        bias = functools.reduce(lambda u, v: u + v,
                                [bb.astype(jnp.float32) for bb in biases])
    bias2 = jnp.pad(bias, (0, ncp - cout)).reshape(1, ncp)

    rows = jnp.arange(mrows, dtype=jnp.int32)
    yy, xx = (rows // wp) % hp, rows % wp
    mask = ((rows < m_grid) & (yy >= pmax) & (yy < pmax + h)
            & (xx >= pmax) & (xx < pmax + w_sp))
    mask = mask.astype(jnp.float32).reshape(mrows, 1)

    tn = 512 if ncp % 512 == 0 else (256 if ncp % 256 == 0 else 128)
    grid = (mrows // tm, ncp // tn)
    cost = pl.CostEstimate(
        flops=2 * mrows * kc * ncp * n_taps, transcendentals=0,
        bytes_accessed=(grid[1] * n_taps * mrows * kc * 2
                        + n_taps * kc * ncp * 2 + mrows * ncp * 4))

    kern = functools.partial(_tapconv_kernel, n_taps=n_taps, tm=tm)
    out, psum, psq = pl.pallas_call(
        kern,
        out_shape=(jax.ShapeDtypeStruct((mrows, ncp), out_dtype),
                   jax.ShapeDtypeStruct((grid[0], 8, ncp), jnp.float32),
                   jax.ShapeDtypeStruct((grid[0], 8, ncp), jnp.float32)),
        grid_spec=pltpu.PrefetchScalarGridSpec(
            num_scalar_prefetch=1,
            grid=grid,
            in_specs=[
                pl.BlockSpec(memory_space=pl.ANY),                     # flat slab (HBM)
                pl.BlockSpec((n_taps, kc, tn), lambda i, j, offs: (0, 0, j)),
                pl.BlockSpec((1, tn), lambda i, j, offs: (0, j)),
                pl.BlockSpec((tm, 1), lambda i, j, offs: (i, 0)),
            ],
            out_specs=[
                pl.BlockSpec((tm, tn), lambda i, j, offs: (i, j)),
                pl.BlockSpec((1, 8, tn), lambda i, j, offs: (i, 0, j)),
                pl.BlockSpec((1, 8, tn), lambda i, j, offs: (i, 0, j)),
            ],
            scratch_shapes=[pltpu.VMEM((2, tm, kc), jnp.bfloat16),
                            pltpu.SemaphoreType.DMA((2,)),
                            pltpu.VMEM((tm, tn), jnp.float32)]),
        compiler_params=pltpu.CompilerParams(
            dimension_semantics=("parallel", "parallel"),
            vmem_limit_bytes=VMEM_LIMIT),
        cost_estimate=cost,
    )(offs, a_flat, w_taps, bias2, mask)

    y = out[:m_grid].reshape(n, hp, wp, ncp)[:, pmax:pmax + h,
                                             pmax:pmax + w_sp, :cout]
    csum = psum[:, 0, :cout].sum(axis=0)
    csq = psq[:, 0, :cout].sum(axis=0)
    return y, (csum, csq, float(n * h * w_sp))


# ---------------------------------------------------------------------------
# BatchNorm apply (+residual)(+ReLU): single pipelined sweep.  Statistics come
# fused from the conv epilogues; scale/shift are tiny and computed in JAX.
# ---------------------------------------------------------------------------
def _bn_apply_kernel(x_ref, scale_ref, shift_ref, *rest, has_res, relu):
    if has_res:
        res_ref, o_ref = rest
    else:
        (o_ref,) = rest
        res_ref = None
    y = x_ref[...].astype(jnp.float32) * scale_ref[...] + shift_ref[...]
    if has_res:
        y = y + res_ref[...].astype(jnp.float32)
    if relu:
        y = jnp.maximum(y, 0.0)
    o_ref[...] = y.astype(o_ref.dtype)


def bn_act(x, stats, residual=None, relu=True, out_dtype=jnp.bfloat16):
    n, h, w_sp, c = x.shape
    csum, csq, count = stats
    mean = csum / count
    var = jnp.maximum(csq / count - mean * mean, 0.0)   # clamp: no rsqrt NaN
    scale = jax.lax.rsqrt(var + BN_EPS)
    shift = -mean * scale

    m = n * h * w_sp
    x2 = x.reshape(m, c)
    res2 = residual.reshape(m, c) if residual is not None else None

    # Lane-dense fold for narrow channel counts (stem C=64): present a 128-wide
    # last dim so the store sweep uses full-width (unmasked) vector stores.
    fold = 1
    if residual is None and c < 128 and 128 % c == 0 and m % (128 // c) == 0:
        fold = 128 // c
    c_eff, m_eff = c * fold, m // fold
    if fold > 1:
        x2 = x2.reshape(m_eff, c_eff)
    scale2 = jnp.tile(scale.astype(jnp.float32), fold).reshape(1, c_eff)
    shift2 = jnp.tile(shift.astype(jnp.float32), fold).reshape(1, c_eff)

    cap = _round_up(min(4096, max(256, (2 * 1024 * 1024) // (2 * c_eff))), 8)
    tm, mp = _row_tile(m_eff, cap)
    if mp != m_eff:
        x2 = jnp.pad(x2, ((0, mp - m_eff), (0, 0)))
        if res2 is not None:
            res2 = jnp.pad(res2, ((0, mp - m_eff), (0, 0)))

    args = [x2, scale2, shift2]
    in_specs = [pl.BlockSpec((tm, c_eff), lambda i: (i, 0)),
                pl.BlockSpec((1, c_eff), lambda i: (0, 0)),
                pl.BlockSpec((1, c_eff), lambda i: (0, 0))]
    if res2 is not None:
        args.append(res2)
        in_specs.append(pl.BlockSpec((tm, c_eff), lambda i: (i, 0)))

    kern = functools.partial(_bn_apply_kernel, has_res=res2 is not None, relu=relu)
    out = pl.pallas_call(
        kern,
        out_shape=jax.ShapeDtypeStruct((mp, c_eff), out_dtype),
        grid=(mp // tm,),
        in_specs=in_specs,
        out_specs=pl.BlockSpec((tm, c_eff), lambda i: (i, 0)),
        compiler_params=pltpu.CompilerParams(
            dimension_semantics=("parallel",), vmem_limit_bytes=VMEM_LIMIT),
    )(*args)
    return out[:m_eff].reshape(n, h, w_sp, c)


# ---------------------------------------------------------------------------
# MaxPool2d(kernel=3, stride=2, padding=1, ceil_mode=True), PyTorch semantics.
# TODO(synk): left to fused XLA strided slices (perf-review option 1): no 9x
# HBM staging and no separate kernel launch for this single stem op.
# ---------------------------------------------------------------------------
def maxpool_3x3_s2_ceil(x):
    n, h, w_sp, c = x.shape
    k, s, p = 3, 2, 1

    def outdim(d):
        o = -(-(d + 2 * p - k) // s) + 1
        if (o - 1) * s >= d + p:
            o -= 1
        return o

    ho, wo = outdim(h), outdim(w_sp)
    need_h = (ho - 1) * s + k
    need_w = (wo - 1) * s + k
    xp = jnp.pad(x, ((0, 0), (p, need_h - h - p), (p, need_w - w_sp - p), (0, 0)),
                 constant_values=-jnp.inf)
    out = None
    for ky in range(k):
        for kx in range(k):
            sl = xp[:, ky:ky + s * (ho - 1) + 1:s, kx:kx + s * (wo - 1) + 1:s, :]
            out = sl if out is None else jnp.maximum(out, sl)
    return out


# ---------------------------------------------------------------------------
# Conv dispatcher
# ---------------------------------------------------------------------------
def im2col(x, kh, kw, stride, dilation, padding):
    n, h, w, c = x.shape
    ho = (h + 2 * padding - dilation * (kh - 1) - 1) // stride + 1
    wo = (w + 2 * padding - dilation * (kw - 1) - 1) // stride + 1
    xp = jnp.pad(x, ((0, 0), (padding, padding), (padding, padding), (0, 0)))
    cols = []
    for ky in range(kh):
        for kx in range(kw):
            ys = ky * dilation
            xs = kx * dilation
            cols.append(xp[:, ys:ys + stride * (ho - 1) + 1:stride,
                           xs:xs + stride * (wo - 1) + 1:stride, :])
    patches = jnp.concatenate(cols, axis=-1)
    return patches.reshape(n * ho * wo, kh * kw * c), (n, ho, wo)


def conv2d(x, w, bias=None, *, stride=1, dilation=1, padding=0,
           out_dtype=jnp.bfloat16):
    """Returns (y_nhwc, (chan_sum, chan_sumsq, count)); stats in f32."""
    kh, kw, cin, cout = w.shape
    if kh == 1 and kw == 1:
        if stride > 1:
            x = x[:, ::stride, ::stride, :]
        n, h, w_sp, _ = x.shape
        bias_v = jnp.zeros((cout,), jnp.float32) if bias is None else bias
        y2, cs, cq = matmul_bias(x.reshape(n * h * w_sp, cin),
                                 w.reshape(cin, cout), bias_v, out_dtype=out_dtype)
        return y2.reshape(n, h, w_sp, cout), (cs, cq, float(n * h * w_sp))
    if stride == 1 and kh == kw and padding == dilation * (kh // 2):
        return conv_taps(x, [w], None if bias is None else [bias], [dilation],
                         out_dtype=out_dtype)
    # TODO(synk): the lone strided non-1x1 conv (7x7/s2 stem, tiny Cin) still uses
    # HBM-materialized im2col ahead of the Pallas matmul.
    patches, (n, ho, wo) = im2col(x, kh, kw, stride, dilation, padding)
    bias_v = jnp.zeros((cout,), jnp.float32) if bias is None else bias
    y2, cs, cq = matmul_bias(patches, w.reshape(kh * kw * cin, cout), bias_v,
                             out_dtype=out_dtype)
    return y2.reshape(n, ho, wo, cout), (cs, cq, float(n * ho * wo))


# ---------------------------------------------------------------------------
# Parameters & forward
# ---------------------------------------------------------------------------
def init_params(key, in_channels, layers, num_classes):
    keys = iter(jax.random.split(key, 64))

    def conv_w(kh, kw, cin, cout):
        return jax.random.normal(next(keys), (kh, kw, cin, cout), jnp.float32) * 0.01

    params = {"conv1_w": conv_w(7, 7, in_channels, 64)}
    inplanes = 64
    cfg = [(64, layers[0], 1, 1), (128, layers[1], 2, 1),
           (256, layers[2], 1, 2), (512, layers[3], 1, 4)]
    for li, (planes, blocks, stride, dilation) in enumerate(cfg):
        blist = []
        for bi in range(blocks):
            p = {
                "w1": conv_w(1, 1, inplanes, planes),
                "w2": conv_w(3, 3, planes, planes),
                "w3": conv_w(1, 1, planes, planes * EXPANSION),
            }
            if bi == 0 and (stride != 1 or inplanes != planes * EXPANSION
                            or dilation in (2, 4)):
                p["wds"] = conv_w(1, 1, inplanes, planes * EXPANSION)
            blist.append(p)
            inplanes = planes * EXPANSION
        params[f"layer{li + 1}"] = (blist, stride, dilation)

    cls = []
    for _dil in (6, 12, 18, 24):   # 4 classifier convs exist; forward uses [0] and [1]
        w = conv_w(3, 3, 512 * EXPANSION, num_classes)
        b = jax.random.normal(next(keys), (num_classes,), jnp.float32) * 0.01
        cls.append((w, b))
    params["cls"] = cls
    return params


def bottleneck(x, p, stride, dilation):
    y, st = conv2d(x, p["w1"], stride=stride)
    y = bn_act(y, st, relu=True)
    y, st = conv2d(y, p["w2"], dilation=dilation, padding=dilation)
    y = bn_act(y, st, relu=True)
    y, st3 = conv2d(y, p["w3"])
    if "wds" in p:
        r, st_ds = conv2d(x, p["wds"], stride=stride)
        res = bn_act(r, st_ds, relu=False)
    else:
        res = x
    # BN(conv3) + residual + ReLU fused into one tiled sweep.
    return bn_act(y, st3, residual=res, relu=True)


def resnet_forward(x_nchw, params):
    x = jnp.transpose(x_nchw, (0, 2, 3, 1)).astype(jnp.bfloat16)  # NCHW -> NHWC
    y, st = conv2d(x, params["conv1_w"], stride=2, padding=3)     # conv1 (no bias)
    x = bn_act(y, st, relu=True)                                  # bn1 + relu
    x = maxpool_3x3_s2_ceil(x)                                    # maxpool
    for li in range(1, 5):
        blist, stride, dilation = params[f"layer{li}"]
        for bi, p in enumerate(blist):
            x = bottleneck(x, p, stride if bi == 0 else 1, dilation)

    # layer5 = Classifier_Module: the PyTorch forward's early return means the
    # output is conv2d_list[0](x) + conv2d_list[1](x).  Both dilated convs are
    # folded into one tap-conv kernel (18 taps, summed bias) -- no HBM concat.
    (w0, b0), (w1, b1) = params["cls"][0], params["cls"][1]
    y, _ = conv_taps(x, [w0, w1], [b0, b1], [6, 12], out_dtype=jnp.float32)
    return jnp.transpose(y, (0, 3, 1, 2))                         # NHWC -> NCHW


if __name__ == "__main__":
    key = jax.random.PRNGKey(0)
    kx, kp = jax.random.split(key)
    in_channels, layers, num_classes = 4, [1, 1, 1, 1], 8
    x = jax.random.normal(kx, (2, in_channels, 16, 16), jnp.float32)  # NCHW input
    params = init_params(kp, in_channels, layers, num_classes)

    out = resnet_forward(x, params)
    out = jax.block_until_ready(out)
    assert out.shape == (2, num_classes, 3, 3), out.shape
    assert bool(jnp.all(jnp.isfinite(out)))
    print("KERNEL_OK")
</pallas_src>

<mosaic_0001>
module attributes {stable_mosaic.version = 11 : i64} {
  func.func @_matmul_kernel(%arg0: i32, %arg1: i32, %arg2: i32, %arg3: memref<64x256xbf16, #tpu.memory_space<vmem>>, %arg4: memref<256x128xbf16, #tpu.memory_space<vmem>>, %arg5: memref<1x128xf32, #tpu.memory_space<vmem>>, %arg6: memref<64x128xbf16, #tpu.memory_space<vmem>>, %arg7: memref<1x8x128xf32, #tpu.memory_space<vmem>>, %arg8: memref<1x8x128xf32, #tpu.memory_space<vmem>>, %arg9: memref<64x128xf32, #tpu.memory_space<vmem>>) attributes {dimension_semantics = [#tpu.dimension_semantics<parallel>, #tpu.dimension_semantics<parallel>, #tpu.dimension_semantics<arbitrary>], iteration_bounds = array<i64: 2, 1, 1>, scalar_prefetch = 0 : i64, scratch_operands = 1 : i64, tpu.core_type = #tpu.core_type<tc>, window_params = [{transform_indices = @transform_0, window_bounds = array<i64: 64, 256>}, {transform_indices = @transform_1, window_bounds = array<i64: 256, 128>}, {transform_indices = @transform_2, window_bounds = array<i64: 1, 128>}, {transform_indices = @transform_3, window_bounds = array<i64: 64, 128>}, {transform_indices = @transform_4, window_bounds = array<i64: 1, 8, 128>}, {transform_indices = @transform_5, window_bounds = array<i64: 1, 8, 128>}]} {
    %c0_i32 = arith.constant 0 : i32
    %0 = arith.cmpi eq, %arg2, %c0_i32 : i32
    %1 = arith.extui %0 : i1 to i32
    %c0_i32_0 = arith.constant 0 : i32
    %2 = arith.cmpi ne, %1, %c0_i32_0 : i32
    scf.if %2 {
      %cst_10 = arith.constant 0.000000e+00 : f32
      %12 = vector.broadcast %cst_10 : f32 to vector<64x128xf32>
      %c0_11 = arith.constant 0 : index
      %c0_12 = arith.constant 0 : index
      %13 = vector.load %arg9[%c0_11, %c0_12] : memref<64x128xf32, #tpu.memory_space<vmem>>, vector<64x128xf32>
      tpu.vector_store %arg9[%c0_11, %c0_12], %12 {strides = array<i32>} : memref<64x128xf32, #tpu.memory_space<vmem>>, vector<64x128xf32>,
    } else {
    }
    %c0 = arith.constant 0 : index
    %c0_1 = arith.constant 0 : index
    %3 = vector.load %arg9[%c0, %c0_1] : memref<64x128xf32, #tpu.memory_space<vmem>>, vector<64x128xf32>
    %c0_2 = arith.constant 0 : index
    %c0_3 = arith.constant 0 : index
    %4 = vector.load %arg3[%c0_2, %c0_3] : memref<64x256xbf16, #tpu.memory_space<vmem>>, vector<64x256xbf16>
    %c0_4 = arith.constant 0 : index
    %c0_5 = arith.constant 0 : index
    %5 = vector.load %arg4[%c0_4, %c0_5] : memref<256x128xbf16, #tpu.memory_space<vmem>>, vector<256x128xbf16>
    %cst = arith.constant dense<0.000000e+00> : vector<64x128xf32>
    %6 = tpu.matmul %4, %5, %cst {dimension_numbers = #tpu.dot_dimension_numbers<[1], [0], [0], [1], [0, 0, 1, 1], [], []>} : vector<64x256xbf16>, vector<256x128xbf16>, vector<64x128xf32> -> vector<64x128xf32>
    %7 = arith.addf %3, %6 : vector<64x128xf32>
    %c0_6 = arith.constant 0 : index
    %c0_7 = arith.constant 0 : index
    %8 = vector.load %arg9[%c0_6, %c0_7] : memref<64x128xf32, #tpu.memory_space<vmem>>, vector<64x128xf32>
    tpu.vector_store %arg9[%c0_6, %c0_7], %7 {strides = array<i32>} : memref<64x128xf32, #tpu.memory_space<vmem>>, vector<64x128xf32>,
    %c0_i32_8 = arith.constant 0 : i32
    %9 = arith.cmpi eq, %arg2, %c0_i32_8 : i32
    %10 = arith.extui %9 : i1 to i32
    %c0_i32_9 = arith.constant 0 : i32
    %11 = arith.cmpi ne, %10, %c0_i32_9 : i32
    scf.if %11 {
      %c0_10 = arith.constant 0 : index
      %c0_11 = arith.constant 0 : index
      %12 = vector.load %arg9[%c0_10, %c0_11] : memref<64x128xf32, #tpu.memory_space<vmem>>, vector<64x128xf32>
      %c0_12 = arith.constant 0 : index
      %c0_13 = arith.constant 0 : index
      %13 = vector.load %arg5[%c0_12, %c0_13] : memref<1x128xf32, #tpu.memory_space<vmem>>, vector<1x128xf32>
      %14 = vector.broadcast %13 : vector<1x128xf32> to vector<64x128xf32>
      %15 = arith.addf %12, %14 : vector<64x128xf32>
      %16 = arith.truncf %15 : vector<64x128xf32> to vector<64x128xbf16>
      %c0_14 = arith.constant 0 : index
      %c0_15 = arith.constant 0 : index
      %17 = vector.load %arg6[%c0_14, %c0_15] : memref<64x128xbf16, #tpu.memory_space<vmem>>, vector<64x128xbf16>
      tpu.vector_store %arg6[%c0_14, %c0_15], %16 {strides = array<i32>} : memref<64x128xbf16, #tpu.memory_space<vmem>>, vector<64x128xbf16>,
      %cst_16 = arith.constant dense<0.000000e+00> : vector<128xf32>
      %18 = vector.multi_reduction <add>, %15, %cst_16 [0] : vector<64x128xf32> to vector<128xf32>
      %19 = vector.shape_cast %18 : vector<128xf32> to vector<1x128xf32>
      %20 = arith.mulf %15, %15 : vector<64x128xf32>
      %cst_17 = arith.constant dense<0.000000e+00> : vector<128xf32>
      %21 = vector.multi_reduction <add>, %20, %cst_17 [0] : vector<64x128xf32> to vector<128xf32>
      %22 = vector.shape_cast %21 : vector<128xf32> to vector<1x128xf32>
      %23 = vector.shape_cast %19 : vector<1x128xf32> to vector<1x1x128xf32>
      %24 = vector.shape_cast %23 : vector<1x1x128xf32> to vector<1x1x128xf32>
      %25 = vector.broadcast %24 : vector<1x1x128xf32> to vector<1x8x128xf32>
      %c0_18 = arith.constant 0 : index
      %c0_19 = arith.constant 0 : index
      %c0_20 = arith.constant 0 : index
      %26 = vector.load %arg7[%c0_18, %c0_19, %c0_20] : memref<1x8x128xf32, #tpu.memory_space<vmem>>, vector<1x8x128xf32>
      tpu.vector_store %arg7[%c0_18, %c0_19, %c0_20], %25 {strides = array<i32>} : memref<1x8x128xf32, #tpu.memory_space<vmem>>, vector<1x8x128xf32>,
      %27 = vector.shape_cast %22 : vector<1x128xf32> to vector<1x1x128xf32>
      %28 = vector.shape_cast %27 : vector<1x1x128xf32> to vector<1x1x128xf32>
      %29 = vector.broadcast %28 : vector<1x1x128xf32> to vector<1x8x128xf32>
      %c0_21 = arith.constant 0 : index
      %c0_22 = arith.constant 0 : index
      %c0_23 = arith.constant 0 : index
      %30 = vector.load %arg8[%c0_21, %c0_22, %c0_23] : memref<1x8x128xf32, #tpu.memory_space<vmem>>, vector<1x8x128xf32>
      tpu.vector_store %arg8[%c0_21, %c0_22, %c0_23], %29 {strides = array<i32>} : memref<1x8x128xf32, #tpu.memory_space<vmem>>, vector<1x8x128xf32>,
    } else {
    }
    return
  }
  func.func @transform_0(%arg0: i32, %arg1: i32, %arg2: i32) -> (i32, i32) {
    %c0_i32 = arith.constant 0 : i32
    return %arg0, %arg2 : i32, i32
  }
  func.func @transform_1(%arg0: i32, %arg1: i32, %arg2: i32) -> (i32, i32) {
    %c0_i32 = arith.constant 0 : i32
    return %arg2, %arg1 : i32, i32
  }
  func.func @transform_2(%arg0: i32, %arg1: i32, %arg2: i32) -> (i32, i32) {
    %c0_i32 = arith.constant 0 : i32
    %c0_i32_0 = arith.constant 0 : i32
    return %c0_i32, %arg1 : i32, i32
  }
  func.func @transform_3(%arg0: i32, %arg1: i32, %arg2: i32) -> (i32, i32) {
    %c0_i32 = arith.constant 0 : i32
    return %arg0, %arg1 : i32, i32
  }
  func.func @transform_4(%arg0: i32, %arg1: i32, %arg2: i32) -> (i32, i32, i32) {
    %c0_i32 = arith.constant 0 : i32
    %c0_i32_0 = arith.constant 0 : i32
    return %arg0, %c0_i32, %arg1 : i32, i32, i32
  }
  func.func @transform_5(%arg0: i32, %arg1: i32, %arg2: i32) -> (i32, i32, i32) {
    %c0_i32 = arith.constant 0 : i32
    %c0_i32_0 = arith.constant 0 : i32
    return %arg0, %c0_i32, %arg1 : i32, i32, i32
  }
}

</mosaic_0001>

<bundles_post_ra>
// kernel: tpu_custom_call.1
= control target key start
LH: loop header
LB: loop body
LE: loop exit
PB: predicated region body
PF: predicated region fallthrough
CT: control target
= control target key end

     0   :  { %11 = vsyncpa [#allocation4], 0  ;;  %s1765_s0 = inlined_call_operand.hbm [shape: bf16[128,256], index: 0, kind: input, shape index: {}]   ;;  %s1766_s1 = inlined_call_operand.hbm [shape: bf16[256,128], index: 1, kind: input, shape index: {}]   ;;  %s1767_s2 = inlined_call_operand.vmem [shape: f32[1,128], index: 2, kind: input, shape index: {}]   ;;  %s1768_s3 = inlined_call_operand.hbm [shape: bf16[128,128], index: 3, kind: output, shape index: {0}]   ;;  %s1769_s4 = inlined_call_operand.hbm [shape: f32[2,8,128], index: 4, kind: output, shape index: {1}]   ;;  %s1770_s5 = inlined_call_operand.hbm [shape: f32[2,8,128], index: 5, kind: output, shape index: {2}]  }
   0x1   :  { %13 = vsyncpa [#allocation4 + $0x1], 0 }
   0x2   :  { %14 = vsyncpa [#allocation7], 0 }
   0x3   :  { %15 = vsyncpa [#allocation5], 0 }
   0x4   :  { %17 = vsyncpa [#allocation5 + $0x1], 0 }
   0x5   :  { %18 = vsyncpa [#allocation10], 0 }
   0x6   :  { %20 = vsyncpa [#allocation10 + $0x1], 0  ;;  %s1458_s18 = smov 0   ;;  %s1460_s19 = smov 0  }
   0x7   :  { %s1462_s20 = smov 0   ;;  %s1464_s21 = smov 0  }
   0x8   :  { %s1466_s22 = smov 0   ;;  %s1468_s23 = smov 0  }
   0x9 LB: > { %s1489_s24 = sadd.s32 4294967295, %s1415_s23   ;;  %s947_s25 = sadd.s32 4294967294, %s1415_s23   ;;  %s1415_s23 = sphi %s1468_s23, %s26_s23   ;;  %s1411_s22 = sphi %s1466_s22, %s1792_s22   ;;  %s1407_s21 = sphi %s1464_s21, %s1791_s21   ;;  %s1403_s20 = sphi %s1462_s20, %s1790_s20   ;;  %s1399_s19 = sphi %s1460_s19, %s1789_s19   ;;  %s1395_s18 = sphi %s1458_s18, %s1788_s18  }
   0xa   : > { %p67_p0 = scmp.ne.s32.totalorder %s1399_s19, %s1395_s18  ;;  %p1771_p1 = scmp.eq.s32.totalorder %s1489_s24, 0 }
   0xb   : > { %p153_p3 = scmp.eq.s32.totalorder %s947_s25, 1  ;;  %p948_p5 = scmp.ge.s32.totalorder %s1415_s23, 1 }
   0xc   : > { %p1500_p4 = por %p1771_p1, %p67_p0  ;;  %p216_p7 = scmp.lt.s32.totalorder %s1415_s23, 3 }
   0xd   : > { %p1505_p6 = por %p153_p3, %p67_p0  ;;  %s1417_s29 = smov [#allocation6]  }
   0xe   : > { %s1774_s26 = scalar_select %p1500_p4, 1, 0 }
   0xf   : > { %s1775_s27 = scalar_select %p1505_p6, 1, 0 }
  0x10   : > { %p1510_p8 = pnand %p948_p5, %p216_p7  ;;  %s232_s30 = sshll.u32 %s1417_s29, 4  ;;  %s233_s30 = int_to_ptr.vmem [resolvable:$true] %s232_s30 }
  0x11   : > { %s45_s7 = sadd.s32 1, %s1411_s22  ;;  %s1211_s10 = scalar_lea.hbm %s1766_s1, 2048 }
  0x12   : > { %s1776_s28 = scalar_select %p1510_p8, 1, 0 }
  0x13   : > { %p1106_p9 = pneg %p1510_p8  ;;  %p1212_p12 = scmp.ne.s32.totalorder %s1766_s1, %s1211_s10 }
  0x14   : > { %p1218_p5 = scmp.lt.u32.totalorder %s1211_s10, %s1766_s1 }
  0x15   : > { %p1519_p11 = pnand %p1106_p9, %p1771_p1 }
  0x17   : > { %p1213_p13 = pneg %p1519_p11 }
  0x19   : > { %p1214_p0 = pnand %p1213_p13, %p1212_p12 }
  0x1b   : > { %p1215_p3 = pneg %p1214_p0 }
  0x1d   : > { %p1220_p7 = pnand %p1218_p5, %p1215_p3 }
  0x1f   : > { %1223 = shalt.err (!%p1220_p7)
}
  0x20   : > { %s1224_s15 = scalar_lea.vmem %s233_s30, 2048  ;;  %p1232_p2 = scmp.lt.s32.totalorder %s233_s30, %s233_s30 }
  0x21   : > { %p1225_p9 = scmp.ne.s32.totalorder %s233_s30, %s1224_s15  ;;  %p1233_p6 = scmp.lt.s32.totalorder %s1224_s15, %s1224_s15 }
  0x23   : > { %p1227_p10 = pnand %p1225_p9, %p1213_p13  ;;  %p1234_p4 = por %p1233_p6, %p1232_p2 }
  0x25   : > { %p1228_p1 = pneg %p1227_p10 }
  0x27   : > { %p1235_p8 = pnand %p1234_p4, %p1228_p1 }
  0x29   : > { %1238 = shalt.err (!%p1235_p8)
}
  0x2a   : > { %s1418_s16 = smov 64   ;;  %s1419_s17 = smov 4  }
  0x2b   : > { %1109 = dma.hbm_to_vmem [thread:$0]  (!%p1519_p11), %s1766_s1, 2048, %s233_s30, [#allocation7], %s1418_s16, %s1418_s16, %s1419_s17  }
  0x2c   : > { %p47_p1 = scmp.ge.s32.totalorder %s45_s7, 2  ;;  %s54_s9 = sadd.s32 1, %s1403_s20 }
  0x2d   : > { %p61_p2 = scmp.ne.s32.totalorder %s1403_s20, %s1399_s19  ;;  %p62_p4 = scmp.eq.s32.totalorder %s1415_s23, 0 }
  0x2e   : > { %s1794_s7 = smov (%p47_p1, %s45_s7), 0  ;;  %p1779_p8 = scmp.eq.s32.totalorder %s1489_s24, 1 }
  0x2f   : > { %p1546_p6 = por %p62_p4, %p61_p2  ;;  %s49_s6 = ssub.s32 %s1411_s22, %s1794_s7 }
  0x30   : > { %p1552_p10 = por %p1779_p8, %p61_p2  ;;  %p1125_p12 = scmp.lt.s32.totalorder %s1415_s23, 2 }
  0x31   : > { %p52_p11 = scmp.eq.s32.totalorder %s49_s6, 0  ;;  %s252_s30 = sand.u32 1, %s1403_s20  }
  0x32   : > { %s952_s12 = sshll.u32 %s252_s30, 6  ;;  %s1005_s14 = sshll.u32 %s1411_s22, 10 }
  0x33   : > { %s1561_s13 = scalar_select %p52_p11, %s1403_s20, %s54_s9  }
  0x34   : > { %s1567_s17 = scalar_lea.hbm %s1765_s0, %s1005_s14  ;;  %s256_s29 = scalar_lea.vmem [#allocation3], %s952_s12 }
  0x35   : > { %s266_s8 = sshll.u32 %s256_s29, 4  ;;  %p1573_p13 = pnand %p1125_p12, %p1546_p6  ;;  %s1569_s8 = int_to_ptr.vmem [resolvable:$true] %s266_s8 }
  0x36   : > { %s1577_s9 = scalar_lea.sflag [#allocation4], %s252_s30  ;;  %s1239_s15 = scalar_lea.hbm %s1567_s17, 1024 }
  0x37   : > { %p1240_p0 = scmp.ne.s32.totalorder %s1567_s17, %s1239_s15  ;;  %p1241_p3 = pneg %p1573_p13 }
  0x38   : > { %s1244_s10 = scalar_lea.hbm %s1765_s0, 2048  ;;  %p1245_p9 = scmp.lt.u32.totalorder %s1567_s17, %s1765_s0 }
  0x39   : > { %p1242_p5 = pnand %p1241_p3, %p1240_p0  ;;  %p1246_p1 = scmp.lt.u32.totalorder %s1244_s10, %s1239_s15 }
  0x3a   : > { %p1248_p4 = scmp.lt.u32.totalorder %s1239_s15, %s1567_s17 }
  0x3b   : > { %p1243_p7 = pneg %p1242_p5  ;;  %p1247_p2 = por %p1246_p1, %p1245_p9 }
  0x3d   : > { %p1249_p6 = por %p1248_p4, %p1247_p2 }
  0x3f   : > { %p1250_p8 = pnand %p1249_p6, %p1243_p7 }
  0x41   : > { %1253 = shalt.err (!%p1250_p8)
}
  0x42   : > { %s1254_s30 = scalar_lea.vmem %s1569_s8, 1024  ;;  %s1420_s12 = smov [#allocation3]  }
  0x43   : > { %p1255_p12 = scmp.ne.s32.totalorder %s1569_s8, %s1254_s30  ;;  %s1259_s14 = sshll.u32 %s1420_s12, 4  ;;  %s1260_s14 = int_to_ptr.vmem [resolvable:$false] %s1259_s14 }
  0x44   : > { %s1261_s16 = scalar_lea.vmem %s1260_s14, 2048  ;;  %p1262_p5 = scmp.lt.s32.totalorder %s1569_s8, %s1260_s14 }
  0x45   : > { %p1257_p11 = pnand %p1255_p12, %p1241_p3  ;;  %p1263_p9 = scmp.lt.s32.totalorder %s1261_s16, %s1254_s30 }
  0x47   : > { %p1258_p0 = pneg %p1257_p11  ;;  %p1264_p1 = por %p1263_p9, %p1262_p5 }
  0x49   : > { %p1265_p2 = pnand %p1264_p1, %p1258_p0 }
  0x4b   : > { %1268 = shalt.err (!%p1265_p2)
}
  0x4c   : > { %s1421_s15 = smov 128   ;;  %s1422_s10 = smov 8  }
  0x4d   : > { %1113 = dma.hbm_to_vmem [thread:$0]  (!%p1573_p13), %s1567_s17, 1024, %s1569_s8, %s1577_s9, %s1421_s15, %s1421_s15, %s1422_s10  }
  0x4e   : > { %p1782_p3 = scmp.ne.s32.totalorder %s1776_s28, 0 }
  0x4f   : > { %s1608_s29 = sand.u32 (!%p1782_p3), 1, %s1399_s19   ;;  %p1783_p7 = scmp.ne.s32.totalorder (!%p1782_p3), %s1774_s26, 0 }
  0x50   : > { %278 = sbr.rel (%p1782_p3) target bundleno = 420 (0x1a4), region = 32  ;;  %s957_s30 = sshll.u32 (!%p1782_p3), %s1608_s29, 6 }
  0x51   : > { %s281_s12 = scalar_lea.sflag (!%p1782_p3), [#allocation4], %s1608_s29  ;;  %s1612_s14 = scalar_lea.vmem (!%p1782_p3), [#allocation3], %s957_s30 }
  0x57   : > { %1378 = dma.done.wait (%p1783_p7), %s281_s12, 1024  }
  0x58   : > { %1380 = vsyncadd (%p1783_p7), %s281_s12, 4294966272  ;;  %p1784_p13 = scmp.eq.s32.totalorder %s1489_s24, 0 }
  0x5a   : > { %1382 = dma.done.wait (%p1784_p13), [#allocation7], 2048   ;;  %p1785_p4 = pmov %p1784_p13 }
  0x5b   : > { %v1183_v0 = vld [vmem:[#allocation6 + $0x40] sm:$0xff]   ;;  %v1185_v2 = vld [vmem:[#allocation6 + $0x48] sm:$0xff]   ;;  %v1187_v4 = vld [vmem:[#allocation6 + $0x50] sm:$0xff]   ;;  %s959_s17 = sshll.u32 %s1608_s29, 5  ;;  %s1014_s9 = sshll.u32 %s1407_s21, 9 }
  0x5c   : > { %1384 = vsyncadd (%p1785_p4), [#allocation7], 4294965248  ;;  %v1184_v1 = vld [vmem:[#allocation6] sm:$0xff]   ;;  %1038 = vmatprep.subr.bf16.mxu0 %v1183_v0  ;;  %1078 = vmatprep.subr.bf16.mxu1 %v1183_v0  ;;  %v1186_v3 = vld [vmem:[#allocation6 + $0x8] sm:$0xff]   ;;  %s1634_s8 = scalar_lea.vmem [#allocation8], %s959_s17  ;;  %s1645_s10 = scalar_lea.hbm %s1768_s3, %s1014_s9 }
  0x5d   : > { %1039 = vmatpush3.bf16.msra.mxu0 %v1184_v1  ;;  %1086 = vmatpush3.bf16.msra.mxu1 %v1184_v1  ;;  %v1188_v5 = vld [vmem:[#allocation6 + $0x10] sm:$0xff]   ;;  %v1189_v6 = vld [vmem:[#allocation6 + $0x58] sm:$0xff]   ;;  %v1191_v8 = vld [vmem:[#allocation6 + $0x60] sm:$0xff]   ;;  %s740_s6 = sshll.u32 %s1634_s8, 4  ;;  %s716_s30 = scalar_lea.sflag [#allocation5], %s1608_s29  ;;  %s1640_s6 = int_to_ptr.vmem [resolvable:$true] %s740_s6 }
  0x5e   : > { %1040 = vmatprep.subr.bf16.mxu0 %v1185_v2  ;;  %1079 = vmatprep.subr.bf16.mxu1 %v1185_v2  ;;  %v1190_v7 = vld [vmem:[#allocation6 + $0x18] sm:$0xff]   ;;  %v1192_v9 = vld [vmem:[#allocation6 + $0x20] sm:$0xff]   ;;  %v1193_v10 = vld [vmem:[#allocation6 + $0x68] sm:$0xff]   ;;  %s1269_s12 = scalar_lea.vmem %s1640_s6, 512 }
  0x5f   : > { %v1201_v11 = vld [vmem:[%s1612_s14 + $0x4] ss:$8 sps:$4 sm:$0xff]   ;;  %v1195_v14 = vld [vmem:[#allocation6 + $0x70] sm:$0xff]   ;;  %v1197_v16 = vld [vmem:[#allocation6 + $0x78] sm:$0xff]   ;;  %p1270_p6 = scmp.ne.s32.totalorder %s1640_s6, %s1269_s12 }
  0x60   : > { %v1204_v12 = vld [vmem:[%s1612_s14 + $0x24] ss:$8 sps:$4 sm:$0xff]   ;;  %564 = vmatprep.mubr.bf16.mxu0 %v1201_v11  ;;  %v1196_v15 = vld [vmem:[#allocation6 + $0x30] sm:$0xff]   ;;  %v1198_v17 = vld [vmem:[#allocation6 + $0x38] sm:$0xff]  }
  0x61   : > { %1041 = vmatpush3.bf16.msra.mxu0 %v1186_v3  ;;  %1087 = vmatpush3.bf16.msra.mxu1 %v1186_v3  ;;  %v1194_v13 = vld [vmem:[#allocation6 + $0x28] sm:$0xff]   ;;  %v1205_v20 = vld [vmem:[%s1612_s14 + $0x14] ss:$8 sps:$4 sm:$0xff]   ;;  %v1207_v22 = vld [vmem:[%s1612_s14 + $0x10] ss:$8 sps:$4 sm:$0xff]   ;;  %p1271_p8 = pnand %p1270_p6, %p1552_p10 }
  0x62   : > { %1042 = vmatprep.subr.bf16.mxu0 %v1187_v4  ;;  %1080 = vmatprep.subr.bf16.mxu1 %v1187_v4  ;;  %v1199_v18 = vld [vmem:[%s1612_s14] ss:$8 sps:$4 sm:$0xff]   ;;  %v1208_v21 = vld [vmem:[%s1612_s14 + $0x34] ss:$8 sps:$4 sm:$0xff]   ;;  %v1210_v23 = vld [vmem:[%s1612_s14 + $0x30] ss:$8 sps:$4 sm:$0xff]  }
  0x63   : > { %580 = vmatprep.mubr.bf16.mxu1 %v1204_v12  ;;  %v1202_v19 = vld [vmem:[%s1612_s14 + $0x20] ss:$8 sps:$4 sm:$0xff]   ;;  %p1272_p12 = pneg %p1271_p8  ;;  %s1423_s14 = smov [#allocation8]  }
  0x64   : > { %v986_v27 = vld [vmem:[%s1767_s2] ss:$0 sm:$0xff]  ;;  %s1273_s26 = sshll.u32 %s1423_s14, 4  ;;  %s1274_s26 = int_to_ptr.vmem [resolvable:$false] %s1273_s26 }
  0x65   : > { %1043 = vmatpush3.bf16.msra.mxu0 %v1188_v5  ;;  %1088 = vmatpush3.bf16.msra.mxu1 %v1188_v5  ;;  %s1275_s28 = scalar_lea.vmem %s1274_s26, 1024  ;;  %p1276_p11 = scmp.lt.s32.totalorder %s1640_s6, %s1274_s26 }
  0x66   : > { %1044 = vmatprep.subr.bf16.mxu0 %v1189_v6  ;;  %1081 = vmatprep.subr.bf16.mxu1 %v1189_v6  ;;  %p1277_p0 = scmp.lt.s32.totalorder %s1275_s28, %s1269_s12 }
  0x68   : > { %p1278_p5 = por %p1277_p0, %p1276_p11 }
  0x69   : > { %1045 = vmatpush3.bf16.msra.mxu0 %v1190_v7  ;;  %1089 = vmatpush3.bf16.msra.mxu1 %v1190_v7 }
  0x6a   : > { %1046 = vmatprep.subr.bf16.mxu0 %v1191_v8  ;;  %1082 = vmatprep.subr.bf16.mxu1 %v1191_v8  ;;  %p1279_p9 = pnand %p1278_p5, %p1272_p12 }
  0x6d   : > { %1047 = vmatpush3.bf16.msra.mxu0 %v1192_v9  ;;  %1090 = vmatpush3.bf16.msra.mxu1 %v1192_v9 }
  0x6e   : > { %1048 = vmatprep.subr.bf16.mxu0 %v1193_v10  ;;  %1083 = vmatprep.subr.bf16.mxu1 %v1193_v10 }
  0x71   : > { %1049 = vmatpush3.bf16.msra.mxu0 %v1194_v13  ;;  %1091 = vmatpush3.bf16.msra.mxu1 %v1194_v13 }
  0x72   : > { %1050 = vmatprep.subr.bf16.mxu0 %v1195_v14  ;;  %1084 = vmatprep.subr.bf16.mxu1 %v1195_v14 }
  0x75   : > { %1051 = vmatpush3.bf16.msra.mxu0 %v1196_v15  ;;  %1092 = vmatpush3.bf16.msra.mxu1 %v1196_v15 }
  0x76   : > { %1052 = vmatprep.subr.bf16.mxu0 %v1197_v16  ;;  %1085 = vmatprep.subr.bf16.mxu1 %v1197_v16 }
  0x79   : > { %1053 = vmatpush3.bf16.msra.mxu0 %v1198_v17  ;;  %1093 = vmatpush3.bf16.msra.mxu1 %v1198_v17 }
  0x7c   : > { %565 = vmatmul.mubr.bf16.vlgmr.msra.gmra.mrb[0].mxu0 %v1199_v18  ;;  %581 = vmatmul.mubr.bf16.vlgmr.msra.gmra.mrb[0].mxu1 %v1202_v19 }
  0x7d   : > { %572 = vmatprep.mubr.bf16.mxu0 %v1205_v20  ;;  %588 = vmatprep.mubr.bf16.mxu1 %v1208_v21 }
  0x84   : > { %573 = vmatmul.mubr.bf16.gmra.mrb[4].mxu0 %v1207_v22  ;;  %589 = vmatmul.mubr.bf16.gmra.mrb[4].mxu1 %v1210_v23 }
 0x14f   : > { %v1054_v24 = vpop.f32.mrb[0].mxu0  ;;  %v1066_v25 = vpop.f32.mrb[0].mxu1 }
 0x150   : > { %v1055_v26 = vpop.f32.mrb[1].mxu0  ;;  %v1067_v28 = vpop.f32.mrb[1].mxu1 }
 0x151   : > { %v1056_v29 = vadd.f32 %v1055_v26, %v1054_v24  ;;  %v1057_v30 = vpop.f32.mrb[2].mxu0  ;;  %v1068_v31 = vadd.f32 %v1067_v28, %v1066_v25  ;;  %v1069_v32 = vpop.f32.mrb[2].mxu1 }
 0x152   : > { %v1058_v33 = vpop.f32.mrb[3].mxu0  ;;  %v1070_v34 = vpop.f32.mrb[3].mxu1 }
 0x153   : > { %v631_v35 = vadd.f32 %v1056_v29, %v986_v27  ;;  %v1059_v36 = vadd.f32 %v1058_v33, %v1057_v30  ;;  %v635_v37 = vadd.f32 %v1068_v31, %v986_v27  ;;  %v1071_v38 = vadd.f32 %v1070_v34, %v1069_v32 }
 0x155   : > { %v632_v39 = vadd.f32 %v1059_v36, %v986_v27  ;;  %v636_v40 = vadd.f32 %v1071_v38, %v986_v27  ;;  %v692_v41 = vmul.f32 %v631_v35, %v631_v35  ;;  %v696_v6 = vmul.f32 %v635_v37, %v635_v37 }
 0x157   : > { %v1018_v42 = vpack.c.bf16 %v632_v39, %v631_v35  ;;  %v679_v43 = vadd.f32 %v632_v39, %v631_v35  ;;  %v693_v44 = vmul.f32 %v632_v39, %v632_v39  ;;  %v1060_v45 = vpop.f32.mrb[4].mxu0  ;;  %v1028_v46 = vpack.c.bf16 %v636_v40, %v635_v37  ;;  %v1072_v47 = vpop.f32.mrb[4].mxu1 }
 0x158   : > { %v1061_v48 = vpop.f32.mrb[5].mxu0  ;;  %v1073_v49 = vpop.f32.mrb[5].mxu1  ;;  %v697_v9 = vmul.f32 %v636_v40, %v636_v40 }
 0x159   : > { %1019 = vst [vmem:[%s1634_s8] sm:$0xff] %v1018_v42   ;;  %v700_v50 = vadd.f32 %v693_v44, %v692_v41  ;;  %1036 = vst [vmem:[%s1634_s8 + $0x10] sm:$0xff] %v1028_v46   ;;  %v1062_v51 = vadd.f32 %v1061_v48, %v1060_v45  ;;  %v1063_v52 = vpop.f32.mrb[6].mxu0  ;;  %v1074_v53 = vadd.f32 %v1073_v49, %v1072_v47  ;;  %v1075_v54 = vpop.f32.mrb[6].mxu1 }
 0x15a   : > { %v1064_v55 = vpop.f32.mrb[7].mxu0  ;;  %v1076_v56 = vpop.f32.mrb[7].mxu1 }
 0x15b   : > { %v633_v57 = vadd.f32 %v1062_v51, %v986_v27  ;;  %v1065_v58 = vadd.f32 %v1064_v55, %v1063_v52  ;;  %v1077_v59 = vadd.f32 %v1076_v56, %v1075_v54  ;;  %v637_v60 = vadd.f32 %v1074_v53, %v986_v27 }
 0x15d   : > { %v680_v61 = vadd.f32 %v679_v43, %v633_v57  ;;  %v694_v62 = vmul.f32 %v633_v57, %v633_v57  ;;  %v634_v63 = vadd.f32 %v1065_v58, %v986_v27  ;;  %v638_v0 = vadd.f32 %v1077_v59, %v986_v27 }
 0x15e   : > { %v698_v12 = vmul.f32 %v637_v60, %v637_v60 }
 0x15f   : > { %v701_v1 = vadd.f32 %v700_v50, %v694_v62  ;;  %v1023_v2 = vpack.c.bf16 %v634_v63, %v633_v57  ;;  %v681_v3 = vadd.f32 %v680_v61, %v634_v63  ;;  %v695_v4 = vmul.f32 %v634_v63, %v634_v63 }
 0x160   : > { %v1033_v5 = vpack.c.bf16 %v638_v0, %v637_v60 }
 0x161   : > { %1035 = vst [vmem:[%s1634_s8 + $0x8] sm:$0xff] %v1023_v2   ;;  %v682_v7 = vadd.f32 %v681_v3, %v635_v37  ;;  %v702_v8 = vadd.f32 %v701_v1, %v695_v4 }
 0x162   : > { %1037 = vst [vmem:[%s1634_s8 + $0x18] sm:$0xff] %v1033_v5  }
 0x163   : > { %v703_v10 = vadd.f32 %v702_v8, %v696_v6  ;;  %v683_v11 = vadd.f32 %v682_v7, %v636_v40 }
 0x164   : > { %1282 = shalt.err (!%p1279_p9)
}
 0x165   : > { %s1283_s17 = scalar_lea.hbm %s1645_s10, 512  ;;  %s1287_s16 = scalar_lea.hbm %s1768_s3, 1024 }
 0x166   : > { %p1284_p1 = scmp.ne.s32.totalorder %s1645_s10, %s1283_s17  ;;  %p1288_p7 = scmp.lt.u32.totalorder %s1645_s10, %s1768_s3 }
 0x167   : > { %p1289_p13 = scmp.lt.u32.totalorder %s1287_s16, %s1283_s17  ;;  %p1291_p6 = scmp.lt.u32.totalorder %s1283_s17, %s1645_s10 }
 0x168   : > { %p1285_p2 = pnand %p1284_p1, %p1552_p10 }
 0x169   : > { %p1290_p4 = por %p1289_p13, %p1288_p7 }
 0x16a   : > { %p1286_p3 = pneg %p1285_p2 }
 0x16b   : > { %p1292_p8 = por %p1291_p6, %p1290_p4 }
 0x16d   : > { %p1293_p12 = pnand %p1292_p8, %p1286_p3 }
 0x16f   : > { %1296 = shalt.err (!%p1293_p12)
}
 0x170   : > { %s1424_s12 = smov 64   ;;  %s1425_s26 = smov 4   ;;  %v684_v13 = vadd.f32 %v683_v11, %v637_v60  ;;  %v704_v14 = vadd.f32 %v703_v10, %v697_v9  ;;  %v699_v17 = vmul.f32 %v638_v0, %v638_v0 }
 0x171   : > { %1100 = dma.vmem_to_hbm [thread:$0]  (%p1552_p10), %s1640_s6, 512, %s1645_s10, %s716_s30, %s1424_s12, %s1424_s12, %s1425_s26  }
 0x172   : > { %v705_v15 = vadd.f32 %v704_v14, %v698_v12  ;;  %v685_v16 = vadd.f32 %v684_v13, %v638_v0  ;;  %s960_s28 = sshll.u32 %s1608_s29, 3  ;;  %s720_s17 = sand.u32 1, %s1489_s24  }
 0x173   : > { %s1000_s8 = sshll.u32 %s1407_s21, 7  ;;  %s320_s9 = scalar_lea.vmem [#allocation9], %s960_s28 }
 0x174   : > { %v686_v18 = vrot.slane %v685_v16, 4  ;;  %v706_v19 = vadd.f32 %v705_v15, %v699_v17  ;;  %s757_s16 = sshll.u32 %s320_s9, 4  ;;  %s1676_s6 = scalar_lea.vmem [#allocation11], %s960_s28  ;;  %s1684_s16 = int_to_ptr.vmem [resolvable:$true] %s757_s16 }
 0x175   : > { %s771_s10 = sshll.u32 %s1676_s6, 4  ;;  %s1682_s15 = scalar_lea.hbm %s1769_s4, %s1000_s8  ;;  %s1691_s10 = int_to_ptr.vmem [resolvable:$true] %s771_s10 }
 0x176   : > { %v687_v20 = vadd.f32 %v686_v18, %v685_v16  ;;  %v707_v21 = vrot.slane %v706_v19, 4  ;;  %s1689_s14 = scalar_lea.hbm %s1770_s5, %s1000_s8  ;;  %s1693_s12 = scalar_lea.sflag [#allocation10], %s720_s17 }
 0x177   : > { %s1297_s26 = scalar_lea.vmem %s1684_s16, 128  ;;  %s1426_s28 = smov [#allocation9]  }
 0x178   : > { %v688_v22 = vrot.slane %v687_v20, 2  ;;  %v708_v23 = vadd.f32 %v707_v21, %v706_v19  ;;  %p1298_p11 = scmp.ne.s32.totalorder %s1684_s16, %s1297_s26  ;;  %s1301_s30 = sshll.u32 %s1426_s28, 4  ;;  %s1302_s30 = int_to_ptr.vmem [resolvable:$false] %s1301_s30 }
 0x179   : > { %s1303_s29 = scalar_lea.vmem %s1302_s30, 256  ;;  %p1304_p9 = scmp.lt.s32.totalorder %s1684_s16, %s1302_s30 }
 0x17a   : > { %v689_v24 = vadd.f32 %v688_v22, %v687_v20  ;;  %v709_v25 = vrot.slane %v708_v23, 2  ;;  %p1299_p0 = pnand %p1298_p11, %p1552_p10  ;;  %p1305_p1 = scmp.lt.s32.totalorder %s1303_s29, %s1297_s26 }
 0x17c   : > { %v710_v26 = vadd.f32 %v709_v25, %v708_v23  ;;  %v690_v27 = vrot.slane %v689_v24, 1  ;;  %p1300_p5 = pneg %p1299_p0  ;;  %p1306_p2 = por %p1305_p1, %p1304_p9 }
 0x17e   : > { %v691_v28 = vadd.f32 %v690_v27, %v689_v24  ;;  %v711_v29 = vrot.slane %v710_v26, 1  ;;  %p1307_p3 = pnand %p1306_p2, %p1300_p5 }
 0x180   : > { %713 = vst [vmem:[%s320_s9] sm:$0xff] %v691_v28  ;;  %v712_v30 = vadd.f32 %v711_v29, %v710_v26 }
 0x181   : > { %1310 = shalt.err (!%p1307_p3)
}
 0x182   : > { %s1311_s17 = scalar_lea.hbm %s1682_s15, 128  ;;  %s1315_s21 = scalar_lea.hbm %s1769_s4, 256 }
 0x183   : > { %p1312_p7 = scmp.ne.s32.totalorder %s1682_s15, %s1311_s17  ;;  %p1316_p6 = scmp.lt.u32.totalorder %s1682_s15, %s1769_s4 }
 0x184   : > { %p1317_p8 = scmp.lt.u32.totalorder %s1315_s21, %s1311_s17  ;;  %p1319_p11 = scmp.lt.u32.totalorder %s1311_s17, %s1682_s15 }
 0x185   : > { %p1313_p13 = pnand %p1312_p7, %p1552_p10 }
 0x186   : > { %p1318_p12 = por %p1317_p8, %p1316_p6 }
 0x187   : > { %p1314_p4 = pneg %p1313_p13 }
 0x188   : > { %p1320_p0 = por %p1319_p11, %p1318_p12 }
 0x18a   : > { %p1321_p5 = pnand %p1320_p0, %p1314_p4 }
 0x18c   : > { %1324 = shalt.err (!%p1321_p5)
}
 0x18d   : > { %1101 = dma.vmem_to_hbm [thread:$0]  (%p1552_p10), %s1684_s16, 128, %s1682_s15, %s1693_s12   ;;  %714 = vst [vmem:[%s1676_s6] sm:$0xff] %v712_v30 }
 0x18e   : > { %s1325_s26 = scalar_lea.vmem %s1691_s10, 128  ;;  %s1427_s30 = smov [#allocation11]  }
 0x18f   : > { %p1326_p9 = scmp.ne.s32.totalorder %s1691_s10, %s1325_s26  ;;  %s1329_s29 = sshll.u32 %s1427_s30, 4  ;;  %s1330_s29 = int_to_ptr.vmem [resolvable:$false] %s1329_s29 }
 0x190   : > { %s1331_s17 = scalar_lea.vmem %s1330_s29, 256  ;;  %p1332_p3 = scmp.lt.s32.totalorder %s1691_s10, %s1330_s29 }
 0x191   : > { %p1327_p1 = pnand %p1326_p9, %p1552_p10  ;;  %p1333_p7 = scmp.lt.s32.totalorder %s1331_s17, %s1325_s26 }
 0x193   : > { %p1328_p2 = pneg %p1327_p1  ;;  %p1334_p13 = por %p1333_p7, %p1332_p3 }
 0x195   : > { %p1335_p4 = pnand %p1334_p13, %p1328_p2 }
 0x197   : > { %1338 = shalt.err (!%p1335_p4)
}
 0x198   : > { %s1339_s16 = scalar_lea.hbm %s1689_s14, 128  ;;  %s1343_s8 = scalar_lea.hbm %s1770_s5, 256 }
 0x199   : > { %p1340_p6 = scmp.ne.s32.totalorder %s1689_s14, %s1339_s16  ;;  %p1344_p11 = scmp.lt.u32.totalorder %s1689_s14, %s1770_s5 }
 0x19a   : > { %p1345_p0 = scmp.lt.u32.totalorder %s1343_s8, %s1339_s16  ;;  %p1347_p9 = scmp.lt.u32.totalorder %s1339_s16, %s1689_s14 }
 0x19b   : > { %p1341_p8 = pnand %p1340_p6, %p1552_p10 }
 0x19c   : > { %p1346_p5 = por %p1345_p0, %p1344_p11 }
 0x19d   : > { %p1342_p12 = pneg %p1341_p8 }
 0x19e   : > { %p1348_p1 = por %p1347_p9, %p1346_p5 }
 0x1a0   : > { %p1349_p2 = pnand %p1348_p1, %p1342_p12 }
 0x1a2   : > { %1352 = shalt.err (!%p1349_p2)
}
 0x1a3   : > { %1102 = dma.vmem_to_hbm [thread:$0]  (%p1552_p10), %s1691_s10, 128, %s1689_s14, %s1693_s12  }
 0x1a4 PF: > { %s783_s24 = sand.u32 1, %s1395_s18   ;;  %p1786_p3 = scmp.ne.s32.totalorder %s1775_s27, 0 }
 0x1a5   : > { %p1787_p7 = scmp.ge.s32.totalorder %s1415_s23, 2  ;;  %s784_s28 = scalar_lea.sflag [#allocation5], %s783_s24 }
 0x1a7   : > { %p1115_p13 = pnand %p1787_p7, %p1786_p3 }
 0x1a9   : > { %1386 = dma.done.wait (!%p1115_p13), %s784_s28, 512  }
 0x1aa   : > { %1388 = vsyncadd (!%p1115_p13), %s784_s28, 4294966784  ;;  %s792_s26 = sand.u32 1, %s947_s25  }
 0x1ab   : > { %s793_s30 = scalar_lea.sflag [#allocation10], %s792_s26 }
 0x1ac   : > { %1390 = dma.done.wait (!%p1115_p13), %s793_s30, 256  }
 0x1ad   : > { %1392 = vsyncadd (!%p1115_p13), %s793_s30, 4294967040  ;;  %s26_s23 = sadd.s32 1, %s1415_s23   ;;  %s1788_s18 = smov %s1399_s19 }
 0x1ae   : > { %p23_p10 = scmp.ge.s32.totalorder %s26_s23, 4   ;;  %s1789_s19 = smov %s1403_s20 }
 0x1af   : > { %s1790_s20 = smov %s1561_s13  ;;  %s1791_s21 = smov %s1411_s22 }
 0x1b0   : > { %s1792_s22 = smov %s1794_s7  ;;  %25 = sbr.rel (!%p23_p10) target bundleno = 9 (0x9), region = 125 }
 0x1b7   :  { %807 = vsyncpa [#allocation4], 1 }
 0x1b8   :  { %809 = vsyncpa [#allocation4 + $0x1], 1 }
 0x1b9   :  { %810 = vsyncpa [#allocation7], 1 }
 0x1ba   :  { %811 = vsyncpa [#allocation5], 1 }
 0x1bb   :  { %813 = vsyncpa [#allocation5 + $0x1], 1 }
 0x1bc   :  { %814 = vsyncpa [#allocation10], 1 }
 0x1bd   :  { %816 = vsyncpa [#allocation10 + $0x1], 1 }

</bundles_post_ra>
